<compile_context>
chip_gen: v7x
topology: tpu7x:2x2x1
jax: 0.10.0
libtpu: 0.0.40
codegen_flags: <defaults>
</compile_context>

<pallas_src>
import functools

import jax
import jax.numpy as jnp
from jax.experimental import pallas as pl
from jax.experimental.pallas import tpu as pltpu


def _patch_merging_kernel(eps,
                          x_ref,                 # (tile_h, 2, W/2, 2C)
                          we_ref, wo_ref,        # (2C, out_dim_p) each (affine folded)
                          bias_ref,              # (1, out_dim_p)  f32
                          out_ref):              # (tile_h * W/2, out_dim_p)
    tile_h, _, wh, c2 = x_ref.shape
    rows = tile_h * wh
    inv_4c = 1.0 / (2.0 * c2)                    # 1 / (4*C)

    # H-parity slices of the (contiguous) tile; each row already holds the two
    # W-parity neighbors side by side along the lane dim (2C wide).
    ve = x_ref[:, 0].astype(jnp.float32)         # (tile_h, W/2, 2C): [x0 | x2]
    vo = x_ref[:, 1].astype(jnp.float32)         # (tile_h, W/2, 2C): [x1 | x3]

    # LayerNorm statistics over the full 4C concatenated channels (f32).
    mean = (jnp.sum(ve, axis=-1, keepdims=True)
            + jnp.sum(vo, axis=-1, keepdims=True)) * inv_4c
    de = ve - mean
    do = vo - mean
    var = (jnp.sum(de * de, axis=-1, keepdims=True)
           + jnp.sum(do * do, axis=-1, keepdims=True)) * inv_4c
    inv_std = jax.lax.rsqrt(var + eps)

    # LN affine (gamma/beta) is pre-folded into we/wo/bias on the host.
    ne = (de * inv_std).reshape(rows, c2)        # free relayout when (W/2) % 8 == 0
    no = (do * inv_std).reshape(rows, c2)

    # reduction: y = [z0|z2]_n @ [[g0*W0],[g2*W2]] + [z1|z3]_n @ [[g1*W1],[g3*W3]] + beta@W
    acc = jnp.dot(ne.astype(we_ref.dtype), we_ref[...],
                  preferred_element_type=jnp.float32)
    acc = acc + jnp.dot(no.astype(wo_ref.dtype), wo_ref[...],
                        preferred_element_type=jnp.float32)
    acc = acc + bias_ref[...]
    out_ref[...] = acc.astype(out_ref.dtype)


def _pick_tile_h(B, Hh, Wh, c2, out_dim_p, x_itemsize, w_itemsize, budget):
    """Largest tile_h whose VMEM footprint fits `budget`, keeps rows 8-aligned
    (or covers all rows), and leaves >= 2 grid steps for the two v7x cores."""
    rows_full = Hh * Wh
    # weights + bias, double-buffered by the default pipeline
    const_bytes = 2 * (2 * c2 * out_dim_p * w_itemsize + out_dim_p * 4)
    best = None
    for d in range(1, Hh + 1):
        if Hh % d:
            continue
        rows = d * Wh
        if rows % 8 and rows != rows_full:
            continue                              # (8,128) store constraint
        tile_bytes = (2 * rows * c2 * x_itemsize * 2        # input block, dbl-buffered
                      + rows * out_dim_p * x_itemsize * 2   # output block, dbl-buffered
                      + 5 * rows * c2 * 4                   # live f32 LN temporaries
                      + rows * out_dim_p * 4)               # f32 accumulator
        if const_bytes + tile_bytes > budget:
            continue
        if d > 1 and B * (Hh // d) < 2:
            continue                              # keep both v7x TensorCores busy
        best = d
    return best if best is not None else Hh       # full block always layout-legal


def patch_merging_forward(x, params, input_resolution, *, tile_h=None, eps=1e-5,
                          vmem_budget_bytes=20 * 1024 * 1024):
    """x: (B, H*W, C) -> (B, H*W/4, out_dim).  params:
       gamma (4C,), beta (4C,), weight (4C, out_dim)  [Linear weight pre-transposed]."""
    H, W = input_resolution
    B, L, C = x.shape
    if L != H * W:
        raise ValueError("input feature has wrong size")
    if H % 2 or W % 2:
        raise ValueError(f"x size ({H}*{W}) are not even.")
    Hh, Wh = H // 2, W // 2
    c2 = 2 * C

    gamma, beta, weight = params["gamma"], params["beta"], params["weight"]
    out_dim = weight.shape[-1]
    out_dim_p = ((out_dim + 127) // 128) * 128    # lane-dense store width

    if tile_h is None:
        tile_h = _pick_tile_h(B, Hh, Wh, c2, out_dim_p,
                              x.dtype.itemsize, weight.dtype.itemsize,
                              vmem_budget_bytes)
    if Hh % tile_h:
        raise ValueError("tile_h must divide H//2")
    rows = tile_h * Wh
    if rows % 8 and rows != Hh * Wh:
        raise ValueError("tile_h * (W//2) must be a multiple of 8 (or tile_h == H//2)")

    # Free reshape: (B, H*W, C) -> (B, H/2, 2, W/2, 2C).  Axis 2 is the H-parity;
    # the W-parity pair is folded into the last (lane) dim.
    xr = x.reshape(B, Hh, 2, Wh, c2)

    # Host side (tiny): regroup per H-parity, fold the LN affine into the weight,
    # and zero-pad out_dim up to a lane-dense multiple of 128.
    g4 = gamma.astype(jnp.float32).reshape(4, C)
    b4 = beta.astype(jnp.float32).reshape(4, C)
    w4 = weight.astype(jnp.float32).reshape(4, C, out_dim)
    ge = jnp.concatenate([g4[0], g4[2]])[:, None]          # (2C, 1)
    go = jnp.concatenate([g4[1], g4[3]])[:, None]
    be = jnp.concatenate([b4[0], b4[2]])                   # (2C,)
    bo = jnp.concatenate([b4[1], b4[3]])
    we = jnp.concatenate([w4[0], w4[2]], axis=0)           # (2C, out_dim)
    wo = jnp.concatenate([w4[1], w4[3]], axis=0)
    we_f = ge * we                                         # gamma folded in
    wo_f = go * wo
    bias = (be @ we + bo @ wo).reshape(1, out_dim)         # beta folded in
    if out_dim_p != out_dim:
        pad = out_dim_p - out_dim
        we_f = jnp.pad(we_f, ((0, 0), (0, pad)))
        wo_f = jnp.pad(wo_f, ((0, 0), (0, pad)))
        bias = jnp.pad(bias, ((0, 0), (0, pad)))
    we_f = we_f.astype(weight.dtype)
    wo_f = wo_f.astype(weight.dtype)
    bias = bias.astype(jnp.float32)

    grid = (B, Hh // tile_h)

    in_specs = [
        pl.BlockSpec((None, tile_h, 2, Wh, c2), lambda bi, hi: (bi, hi, 0, 0, 0)),
        pl.BlockSpec((c2, out_dim_p), lambda bi, hi: (0, 0)),
        pl.BlockSpec((c2, out_dim_p), lambda bi, hi: (0, 0)),
        pl.BlockSpec((1, out_dim_p), lambda bi, hi: (0, 0)),
    ]
    out_specs = pl.BlockSpec((None, rows, out_dim_p), lambda bi, hi: (bi, hi, 0))

    flops = 2 * B * (L // 4) * (2 * c2) * out_dim_p
    bytes_accessed = (x.size * x.dtype.itemsize
                      + B * (L // 4) * out_dim_p * x.dtype.itemsize
                      + (2 * c2 + 1) * out_dim_p * 4)

    out = pl.pallas_call(
        functools.partial(_patch_merging_kernel, eps),
        out_shape=jax.ShapeDtypeStruct((B, L // 4, out_dim_p), x.dtype),
        grid=grid,
        in_specs=in_specs,
        out_specs=out_specs,
        compiler_params=pltpu.CompilerParams(
            dimension_semantics=("parallel", "parallel"),
            vmem_limit_bytes=64 * 1024 * 1024),
        cost_estimate=pl.CostEstimate(flops=flops,
                                      transcendentals=B * (L // 4),
                                      bytes_accessed=bytes_accessed),
    )(xr, we_f, wo_f, bias)

    if out_dim_p != out_dim:
        out = out[..., :out_dim]
    return out


def patch_merging_reference(x, params, input_resolution, eps=1e-5):
    """Plain-JAX mirror of the PyTorch PatchMerging.forward."""
    H, W = input_resolution
    B, L, C = x.shape
    xv = x.reshape(B, H, W, C)
    x0 = xv[:, 0::2, 0::2, :]
    x1 = xv[:, 1::2, 0::2, :]
    x2 = xv[:, 0::2, 1::2, :]
    x3 = xv[:, 1::2, 1::2, :]
    z = jnp.concatenate([x0, x1, x2, x3], axis=-1).reshape(B, -1, 4 * C)
    mean = jnp.mean(z, axis=-1, keepdims=True)
    var = jnp.mean((z - mean) ** 2, axis=-1, keepdims=True)
    zn = (z - mean) / jnp.sqrt(var + eps) * params["gamma"] + params["beta"]
    return zn @ params["weight"]


if __name__ == "__main__":
    B = 2
    H = W = 16
    dim = 32
    out_dim = 2 * dim                      # PatchMerging default out_dim

    key = jax.random.PRNGKey(0)
    kx, kg, kb, kw = jax.random.split(key, 4)
    x = jax.random.normal(kx, (B, H * W, dim), jnp.float32)
    params = {
        "gamma": 1.0 + 0.1 * jax.random.normal(kg, (4 * dim,), jnp.float32),
        "beta": 0.1 * jax.random.normal(kb, (4 * dim,), jnp.float32),
        # nn.Linear(4*dim, out_dim, bias=False) weight, pre-transposed to (4C, out)
        "weight": 0.05 * jax.random.normal(kw, (4 * dim, out_dim), jnp.float32),
    }

    out = patch_merging_forward(x, params, (H, W))      # auto tile_h -> grid (2, 1)
    out = jax.block_until_ready(out)

    ref = patch_merging_reference(x, params, (H, W))
    assert out.shape == (B, H * W // 4, out_dim)
    max_err = float(jnp.max(jnp.abs(out - ref)))
    assert jnp.allclose(out, ref, atol=2e-4, rtol=2e-4), max_err

    print("KERNEL_OK")
</pallas_src>

<mosaic_0001>
module attributes {stable_mosaic.version = 11 : i64} {
  func.func @_patch_merging_kernel(%arg0: i32, %arg1: i32, %arg2: memref<1x8x2x8x64xf32, #tpu.memory_space<vmem>>, %arg3: memref<64x128xf32, #tpu.memory_space<vmem>>, %arg4: memref<64x128xf32, #tpu.memory_space<vmem>>, %arg5: memref<1x128xf32, #tpu.memory_space<vmem>>, %arg6: memref<1x64x128xf32, #tpu.memory_space<vmem>>) attributes {dimension_semantics = [#tpu.dimension_semantics<parallel>, #tpu.dimension_semantics<parallel>], iteration_bounds = array<i64: 2, 1>, scalar_prefetch = 0 : i64, scratch_operands = 0 : i64, tpu.core_type = #tpu.core_type<tc>, window_params = [{transform_indices = @transform_0, window_bounds = array<i64: 1, 8, 2, 8, 64>}, {pipeline_mode = #tpu.pipeline_mode<synchronous>, transform_indices = @transform_1, window_bounds = array<i64: 64, 128>}, {pipeline_mode = #tpu.pipeline_mode<synchronous>, transform_indices = @transform_2, window_bounds = array<i64: 64, 128>}, {pipeline_mode = #tpu.pipeline_mode<synchronous>, transform_indices = @transform_3, window_bounds = array<i64: 1, 128>}, {transform_indices = @transform_4, window_bounds = array<i64: 1, 64, 128>}]} {
    %c0 = arith.constant 0 : index
    %c0_0 = arith.constant 0 : index
    %c0_1 = arith.constant 0 : index
    %c0_2 = arith.constant 0 : index
    %c0_3 = arith.constant 0 : index
    %0 = vector.load %arg2[%c0, %c0_0, %c0_1, %c0_2, %c0_3] : memref<1x8x2x8x64xf32, #tpu.memory_space<vmem>>, vector<1x8x1x8x64xf32>
    %1 = vector.shape_cast %0 : vector<1x8x1x8x64xf32> to vector<8x8x64xf32>
    %c0_4 = arith.constant 0 : index
    %c0_5 = arith.constant 0 : index
    %c1 = arith.constant 1 : index
    %c0_6 = arith.constant 0 : index
    %c0_7 = arith.constant 0 : index
    %2 = vector.load %arg2[%c0_4, %c0_5, %c1, %c0_6, %c0_7] : memref<1x8x2x8x64xf32, #tpu.memory_space<vmem>>, vector<1x8x1x8x64xf32>
    %3 = vector.shape_cast %2 : vector<1x8x1x8x64xf32> to vector<8x8x64xf32>
    %cst = arith.constant dense<0.000000e+00> : vector<8x8xf32>
    %4 = vector.multi_reduction <add>, %1, %cst [2] : vector<8x8x64xf32> to vector<8x8xf32>
    %5 = vector.shape_cast %4 : vector<8x8xf32> to vector<8x8x1xf32>
    %cst_8 = arith.constant dense<0.000000e+00> : vector<8x8xf32>
    %6 = vector.multi_reduction <add>, %3, %cst_8 [2] : vector<8x8x64xf32> to vector<8x8xf32>
    %7 = vector.shape_cast %6 : vector<8x8xf32> to vector<8x8x1xf32>
    %8 = arith.addf %5, %7 : vector<8x8x1xf32>
    %cst_9 = arith.constant 7.812500e-03 : f32
    %9 = vector.broadcast %cst_9 : f32 to vector<8x8x1xf32>
    %10 = arith.mulf %8, %9 : vector<8x8x1xf32>
    %11 = vector.broadcast %10 : vector<8x8x1xf32> to vector<8x8x64xf32>
    %12 = arith.subf %1, %11 : vector<8x8x64xf32>
    %13 = vector.broadcast %10 : vector<8x8x1xf32> to vector<8x8x64xf32>
    %14 = arith.subf %3, %13 : vector<8x8x64xf32>
    %15 = arith.mulf %12, %12 : vector<8x8x64xf32>
    %cst_10 = arith.constant dense<0.000000e+00> : vector<8x8xf32>
    %16 = vector.multi_reduction <add>, %15, %cst_10 [2] : vector<8x8x64xf32> to vector<8x8xf32>
    %17 = vector.shape_cast %16 : vector<8x8xf32> to vector<8x8x1xf32>
    %18 = arith.mulf %14, %14 : vector<8x8x64xf32>
    %cst_11 = arith.constant dense<0.000000e+00> : vector<8x8xf32>
    %19 = vector.multi_reduction <add>, %18, %cst_11 [2] : vector<8x8x64xf32> to vector<8x8xf32>
    %20 = vector.shape_cast %19 : vector<8x8xf32> to vector<8x8x1xf32>
    %21 = arith.addf %17, %20 : vector<8x8x1xf32>
    %cst_12 = arith.constant 7.812500e-03 : f32
    %22 = vector.broadcast %cst_12 : f32 to vector<8x8x1xf32>
    %23 = arith.mulf %21, %22 : vector<8x8x1xf32>
    %cst_13 = arith.constant 9.99999974E-6 : f32
    %24 = vector.broadcast %cst_13 : f32 to vector<8x8x1xf32>
    %25 = arith.addf %23, %24 : vector<8x8x1xf32>
    %26 = math.rsqrt %25 : vector<8x8x1xf32>
    %27 = vector.broadcast %26 : vector<8x8x1xf32> to vector<8x8x64xf32>
    %28 = arith.mulf %12, %27 : vector<8x8x64xf32>
    %29 = vector.shape_cast %28 : vector<8x8x64xf32> to vector<64x64xf32>
    %30 = vector.broadcast %26 : vector<8x8x1xf32> to vector<8x8x64xf32>
    %31 = arith.mulf %14, %30 : vector<8x8x64xf32>
    %32 = vector.shape_cast %31 : vector<8x8x64xf32> to vector<64x64xf32>
    %c0_14 = arith.constant 0 : index
    %c0_15 = arith.constant 0 : index
    %33 = vector.load %arg3[%c0_14, %c0_15] : memref<64x128xf32, #tpu.memory_space<vmem>>, vector<64x128xf32>
    %cst_16 = arith.constant dense<0.000000e+00> : vector<64x128xf32>
    %34 = tpu.matmul %29, %33, %cst_16 {dimension_numbers = #tpu.dot_dimension_numbers<[1], [0], [0], [1], [0, 0, 1, 1], [], []>} : vector<64x64xf32>, vector<64x128xf32>, vector<64x128xf32> -> vector<64x128xf32>
    %c0_17 = arith.constant 0 : index
    %c0_18 = arith.constant 0 : index
    %35 = vector.load %arg4[%c0_17, %c0_18] : memref<64x128xf32, #tpu.memory_space<vmem>>, vector<64x128xf32>
    %cst_19 = arith.constant dense<0.000000e+00> : vector<64x128xf32>
    %36 = tpu.matmul %32, %35, %cst_19 {dimension_numbers = #tpu.dot_dimension_numbers<[1], [0], [0], [1], [0, 0, 1, 1], [], []>} : vector<64x64xf32>, vector<64x128xf32>, vector<64x128xf32> -> vector<64x128xf32>
    %37 = arith.addf %34, %36 : vector<64x128xf32>
    %c0_20 = arith.constant 0 : index
    %c0_21 = arith.constant 0 : index
    %38 = vector.load %arg5[%c0_20, %c0_21] : memref<1x128xf32, #tpu.memory_space<vmem>>, vector<1x128xf32>
    %39 = vector.broadcast %38 : vector<1x128xf32> to vector<64x128xf32>
    %40 = arith.addf %37, %39 : vector<64x128xf32>
    %c0_22 = arith.constant 0 : index
    %c0_23 = arith.constant 0 : index
    %c0_24 = arith.constant 0 : index
    %41 = vector.load %arg6[%c0_22, %c0_23, %c0_24] : memref<1x64x128xf32, #tpu.memory_space<vmem>>, vector<1x64x128xf32>
    %42 = vector.shape_cast %41 : vector<1x64x128xf32> to vector<64x128xf32>
    %43 = vector.shape_cast %40 : vector<64x128xf32> to vector<1x64x128xf32>
    tpu.vector_store %arg6[%c0_22, %c0_23, %c0_24], %43 {strides = array<i32>} : memref<1x64x128xf32, #tpu.memory_space<vmem>>, vector<1x64x128xf32>,
    return
  }
  func.func @transform_0(%arg0: i32, %arg1: i32) -> (i32, i32, i32, i32, i32) {
    %c0_i32 = arith.constant 0 : i32
    %c0_i32_0 = arith.constant 0 : i32
    %c0_i32_1 = arith.constant 0 : i32
    %c0_i32_2 = arith.constant 0 : i32
    return %arg0, %arg1, %c0_i32, %c0_i32_0, %c0_i32_1 : i32, i32, i32, i32, i32
  }
  func.func @transform_1(%arg0: i32, %arg1: i32) -> (i32, i32) {
    %c0_i32 = arith.constant 0 : i32
    %c0_i32_0 = arith.constant 0 : i32
    %c0_i32_1 = arith.constant 0 : i32
    return %c0_i32, %c0_i32_0 : i32, i32
  }
  func.func @transform_2(%arg0: i32, %arg1: i32) -> (i32, i32) {
    %c0_i32 = arith.constant 0 : i32
    %c0_i32_0 = arith.constant 0 : i32
    %c0_i32_1 = arith.constant 0 : i32
    return %c0_i32, %c0_i32_0 : i32, i32
  }
  func.func @transform_3(%arg0: i32, %arg1: i32) -> (i32, i32) {
    %c0_i32 = arith.constant 0 : i32
    %c0_i32_0 = arith.constant 0 : i32
    %c0_i32_1 = arith.constant 0 : i32
    return %c0_i32, %c0_i32_0 : i32, i32
  }
  func.func @transform_4(%arg0: i32, %arg1: i32) -> (i32, i32, i32) {
    %c0_i32 = arith.constant 0 : i32
    %c0_i32_0 = arith.constant 0 : i32
    return %arg0, %arg1, %c0_i32 : i32, i32, i32
  }
}

</mosaic_0001>

<bundles_post_ra>
// kernel: tpu_custom_call.1
= control target key start
LH: loop header
LB: loop body
LE: loop exit
PB: predicated region body
PF: predicated region fallthrough
CT: control target
= control target key end

     0   :  { %9 = vsyncpa [#allocation3], 0  ;;  %s1938_s0 = inlined_call_operand.hbm [shape: f32[2,8,2,8,64], index: 0, kind: input, shape index: {}]   ;;  %s1939_s1 = inlined_call_operand.hbm [shape: f32[64,128], index: 1, kind: input, shape index: {}]   ;;  %s1940_s2 = inlined_call_operand.hbm [shape: f32[64,128], index: 2, kind: input, shape index: {}]   ;;  %s1941_s3 = inlined_call_operand.hbm [shape: f32[1,128], index: 3, kind: input, shape index: {}]   ;;  %s1942_s4 = inlined_call_operand.hbm [shape: f32[2,64,128], index: 4, kind: output, shape index: {}]  }
   0x1   :  { %11 = vsyncpa [#allocation3 + $0x1], 0 }
   0x2   :  { %12 = vsyncpa [#allocation6], 0 }
   0x3   :  { %13 = vsyncpa [#allocation9], 0 }
   0x4   :  { %14 = vsyncpa [#allocation4], 0 }
   0x5   :  { %16 = vsyncpa [#allocation4 + $0x1], 0  ;;  %s1447_s15 = smov 0   ;;  %s1449_s16 = smov 0  }
   0x6   :  { %s1451_s17 = smov 0   ;;  %s1453_s18 = smov 0  }
   0x7   :  { %s1455_s19 = smov 0   ;;  %s1457_s20 = smov 0  }
   0x8 LB: > { %s918_s21 = sadd.s32 4294967295, %s1411_s20   ;;  %s919_s22 = sadd.s32 4294967294, %s1411_s20   ;;  %s1411_s20 = sphi %s1457_s20, %s22_s20   ;;  %s1407_s19 = sphi %s1455_s19, %s1969_s19   ;;  %s1403_s18 = sphi %s1453_s18, %s1968_s18   ;;  %s1399_s17 = sphi %s1451_s17, %s1967_s17   ;;  %s1395_s16 = sphi %s1449_s16, %s1966_s16   ;;  %s1391_s15 = sphi %s1447_s15, %s1965_s15  }
   0x9   : > { %p56_p0 = scmp.ne.s32.totalorder %s1395_s16, %s1391_s15  ;;  %p1481_p1 = scmp.eq.s32.totalorder %s918_s21, 0 }
   0xa   : > { %p1485_p2 = scmp.eq.s32.totalorder %s918_s21, 1  ;;  %p151_p3 = scmp.eq.s32.totalorder %s919_s22, 1 }
   0xb   : > { %s1948_s23 = scalar_select %p1481_p1, 1, 0 }
   0xc   : > { %s1949_s24 = scalar_select %p1485_p2, 1, 0 }
   0xd   : > { %p1491_p4 = por %p1481_p1, %p56_p0  ;;  %p920_p5 = scmp.ge.s32.totalorder %s1411_s20, 1 }
   0xe   : > { %p1496_p6 = por %p151_p3, %p56_p0  ;;  %p158_p7 = scmp.lt.s32.totalorder %s1411_s20, 3 }
   0xf   : > { %s1950_s25 = scalar_select %p1491_p4, 1, 0 }
  0x10   : > { %s1951_s26 = scalar_select %p1496_p6, 1, 0 }
  0x11   : > { %p1501_p8 = pnand %p920_p5, %p158_p7  ;;  %s1413_s28 = smov [#allocation5]  }
  0x12   : > { %1952 = sst [smem:[#allocation15_spill]] %s1951_s26  ;;  %s170_s29 = sshll.u32 %s1413_s28, 4  ;;  %s1505_s29 = int_to_ptr.vmem [resolvable:$true] %s170_s29 }
  0x13   : > { %s1953_s27 = scalar_select %p1501_p8, 1, 0 }
  0x14   : > { %p1110_p9 = pneg %p1501_p8  ;;  %s1414_s5 = smov [#allocation7]  }
  0x15   : > { %s183_s6 = sshll.u32 %s1414_s5, 4  ;;  %s1415_s7 = smov [#allocation8]   ;;  %s1516_s6 = int_to_ptr.vmem [resolvable:$true] %s183_s6 }
  0x16   : > { %p1512_p11 = pnand %p1110_p9, %p1481_p1  ;;  %s1518_s8 = sshll.u32 %s1415_s7, 4  ;;  %s198_s8 = int_to_ptr.vmem [resolvable:$true] %s1518_s8 }
  0x17   : > { %s1207_s11 = scalar_lea.hbm %s1939_s1, 1024 }
  0x18   : > { %p1208_p12 = scmp.ne.s32.totalorder %s1939_s1, %s1207_s11  ;;  %p1528_p13 = pneg %p1512_p11 }
  0x19   : > { %p1214_p5 = scmp.lt.u32.totalorder %s1207_s11, %s1939_s1 }
  0x1a   : > { %p1210_p0 = pnand %p1528_p13, %p1208_p12 }
  0x1c   : > { %p1211_p3 = pneg %p1210_p0 }
  0x1e   : > { %p1216_p7 = pnand %p1214_p5, %p1211_p3 }
  0x20   : > { %1219 = shalt.err (!%p1216_p7)
}
  0x21   : > { %s1220_s28 = scalar_lea.vmem %s1505_s29, 1024  ;;  %p1228_p1 = scmp.lt.s32.totalorder %s1505_s29, %s1505_s29 }
  0x22   : > { %p1221_p9 = scmp.ne.s32.totalorder %s1505_s29, %s1220_s28  ;;  %p1229_p4 = scmp.lt.s32.totalorder %s1220_s28, %s1220_s28 }
  0x24   : > { %p1223_p10 = pnand %p1221_p9, %p1528_p13  ;;  %p1230_p12 = por %p1229_p4, %p1228_p1 }
  0x26   : > { %p1224_p6 = pneg %p1223_p10 }
  0x28   : > { %p1231_p0 = pnand %p1230_p12, %p1224_p6 }
  0x2a   : > { %1234 = shalt.err (!%p1231_p0)
}
  0x2b   : > { %s1416_s5 = smov 128   ;;  %s1417_s7 = smov 8  }
  0x2c   : > { %1113 = dma.hbm_to_vmem [thread:$0]  (!%p1512_p11), %s1939_s1, 1024, %s1505_s29, [#allocation6], %s1416_s5, %s1416_s5, %s1417_s7  }
  0x2d   : > { %s1235_s13 = scalar_lea.hbm %s1940_s2, 1024 }
  0x2e   : > { %p1236_p1 = scmp.ne.s32.totalorder %s1940_s2, %s1235_s13  ;;  %p1242_p10 = scmp.lt.u32.totalorder %s1235_s13, %s1940_s2 }
  0x30   : > { %p1238_p4 = pnand %p1236_p1, %p1528_p13 }
  0x32   : > { %p1239_p6 = pneg %p1238_p4 }
  0x34   : > { %p1244_p3 = pnand %p1242_p10, %p1239_p6 }
  0x36   : > { %1247 = shalt.err (!%p1244_p3)
}
  0x37   : > { %s1248_s29 = scalar_lea.vmem %s1516_s6, 1024  ;;  %p1256_p12 = scmp.lt.s32.totalorder %s1516_s6, %s1516_s6 }
  0x38   : > { %p1249_p5 = scmp.ne.s32.totalorder %s1516_s6, %s1248_s29  ;;  %p1257_p0 = scmp.lt.s32.totalorder %s1248_s29, %s1248_s29 }
  0x3a   : > { %p1251_p7 = pnand %p1249_p5, %p1528_p13  ;;  %p1258_p1 = por %p1257_p0, %p1256_p12 }
  0x3c   : > { %p1252_p9 = pneg %p1251_p7 }
  0x3e   : > { %p1259_p4 = pnand %p1258_p1, %p1252_p9 }
  0x40   : > { %1262 = shalt.err (!%p1259_p4)
}
  0x41   : > { %1116 = dma.hbm_to_vmem [thread:$0]  (!%p1512_p11), %s1940_s2, 1024, %s1516_s6, [#allocation6], %s1416_s5, %s1416_s5, %s1417_s7  }
  0x42   : > { %s1263_s12 = scalar_lea.hbm %s1941_s3, 16 }
  0x43   : > { %p1264_p6 = scmp.ne.s32.totalorder %s1941_s3, %s1263_s12  ;;  %p1270_p5 = scmp.lt.u32.totalorder %s1263_s12, %s1941_s3 }
  0x45   : > { %p1266_p10 = pnand %p1264_p6, %p1528_p13 }
  0x47   : > { %p1267_p3 = pneg %p1266_p10 }
  0x49   : > { %p1272_p7 = pnand %p1270_p5, %p1267_p3 }
  0x4b   : > { %1275 = shalt.err (!%p1272_p7)
}
  0x4c   : > { %s1276_s29 = scalar_lea.vmem %s198_s8, 16  ;;  %s1283_s6 = scalar_lea.vmem %s198_s8, 32 }
  0x4d   : > { %p1277_p9 = scmp.ne.s32.totalorder %s198_s8, %s1276_s29  ;;  %p1284_p1 = scmp.lt.s32.totalorder %s198_s8, %s198_s8 }
  0x4e   : > { %p1285_p4 = scmp.lt.s32.totalorder %s1283_s6, %s1276_s29 }
  0x4f   : > { %p1279_p12 = pnand %p1277_p9, %p1528_p13 }
  0x50   : > { %p1286_p8 = por %p1285_p4, %p1284_p1 }
  0x51   : > { %p1280_p0 = pneg %p1279_p12 }
  0x53   : > { %p1287_p2 = pnand %p1286_p8, %p1280_p0 }
  0x55   : > { %1290 = shalt.err (!%p1287_p2)
}
  0x56   : > { %1119 = dma.hbm_to_vmem [thread:$0]  (!%p1512_p11), %s1941_s3, 16, %s198_s8, [#allocation9]  }
  0x57   : > { %s43_s14 = sadd.s32 1, %s1399_s17  ;;  %s34_s10 = sadd.s32 1, %s1407_s19 }
  0x58   : > { %p50_p2 = scmp.ne.s32.totalorder %s1399_s17, %s1395_s16  ;;  %p36_p8 = scmp.ge.s32.totalorder %s34_s10, 2 }
  0x59   : > { %p51_p13 = scmp.eq.s32.totalorder %s1411_s20, 0  ;;  %p1956_p6 = scmp.ne.s32.totalorder %s1949_s24, 0 }
  0x5a   : > { %p1131_p3 = scmp.lt.s32.totalorder %s1411_s20, 2  ;;  %s1971_s10 = smov (%p36_p8, %s34_s10), 0 }
  0x5b   : > { %p1604_p10 = por %p1956_p6, %p50_p2  ;;  %p52_p5 = por %p51_p13, %p50_p2 }
  0x5c   : > { %s208_s11 = sand.u32 1, %s1399_s17   ;;  %s38_s12 = ssub.s32 %s1407_s19, %s1971_s10 }
  0x5d   : > { %p41_p7 = scmp.eq.s32.totalorder %s38_s12, 0  ;;  %s925_s8 = sshll.u32 %s208_s11, 7 }
  0x5e   : > { %s964_s13 = sshll.u32 %s1407_s19, 11  ;;  %s212_s29 = scalar_lea.vmem [#allocation2], %s925_s8 }
  0x5f   : > { %s1616_s21 = scalar_select %p41_p7, %s1399_s17, %s43_s14  }
  0x60   : > { %s1621_s24 = scalar_lea.hbm %s1938_s0, %s964_s13  ;;  %s222_s6 = sshll.u32 %s212_s29, 4  ;;  %s1623_s6 = int_to_ptr.vmem [resolvable:$true] %s222_s6 }
  0x61   : > { %p1627_p11 = pnand %p1131_p3, %p52_p5  ;;  %s1631_s9 = scalar_lea.sflag [#allocation3], %s208_s11 }
  0x62   : > { %s1291_s14 = scalar_lea.hbm %s1621_s24, 2048  ;;  %s1296_s13 = scalar_lea.hbm %s1938_s0, 4096 }
  0x63   : > { %p1292_p9 = scmp.ne.s32.totalorder %s1621_s24, %s1291_s14  ;;  %p1293_p12 = pneg %p1627_p11 }
  0x64   : > { %p1297_p4 = scmp.lt.u32.totalorder %s1621_s24, %s1938_s0  ;;  %p1298_p2 = scmp.lt.u32.totalorder %s1296_s13, %s1291_s14 }
  0x65   : > { %p1294_p0 = pnand %p1293_p12, %p1292_p9  ;;  %p1300_p13 = scmp.lt.u32.totalorder %s1291_s14, %s1621_s24 }
  0x66   : > { %p1299_p8 = por %p1298_p2, %p1297_p4 }
  0x67   : > { %p1295_p1 = pneg %p1294_p0 }
  0x68   : > { %p1301_p6 = por %p1300_p13, %p1299_p8 }
  0x6a   : > { %p1302_p3 = pnand %p1301_p6, %p1295_p1 }
  0x6c   : > { %1305 = shalt.err (!%p1302_p3)
}
  0x6d   : > { %s1306_s11 = scalar_lea.vmem %s1623_s6, 2048  ;;  %s1418_s29 = smov [#allocation2]  }
  0x6e   : > { %p1307_p5 = scmp.ne.s32.totalorder %s1623_s6, %s1306_s11  ;;  %s1311_s12 = sshll.u32 %s1418_s29, 4  ;;  %s1312_s12 = int_to_ptr.vmem [resolvable:$false] %s1311_s12 }
  0x6f   : > { %s1313_s8 = scalar_lea.vmem %s1312_s12, 4096  ;;  %p1314_p0 = scmp.lt.s32.totalorder %s1623_s6, %s1312_s12 }
  0x70   : > { %p1309_p7 = pnand %p1307_p5, %p1293_p12  ;;  %p1315_p4 = scmp.lt.s32.totalorder %s1313_s8, %s1306_s11 }
  0x72   : > { %p1310_p9 = pneg %p1309_p7  ;;  %p1316_p2 = por %p1315_p4, %p1314_p0 }
  0x74   : > { %p1317_p8 = pnand %p1316_p2, %p1310_p9 }
  0x76   : > { %1320 = shalt.err (!%p1317_p8)
}
  0x77   : > { %1123 = dma.hbm_to_vmem [thread:$0]  (!%p1627_p11), %s1621_s24, 2048, %s1623_s6, %s1631_s9, %s1416_s5, %s1416_s5, %s1417_s7  }
  0x78   : > { %p1959_p12 = scmp.ne.s32.totalorder %s1953_s27, 0 }
  0x79   : > { %s1665_s14 = sand.u32 (!%p1959_p12), 1, %s1395_s16   ;;  %p1960_p1 = scmp.ne.s32.totalorder (!%p1959_p12), %s1950_s25, 0 }
  0x7a   : > { %234 = sbr.rel (%p1959_p12) target bundleno = 713 (0x2c9), region = 36  ;;  %s929_s13 = sshll.u32 (!%p1959_p12), %s1665_s14, 7 }
  0x7b   : > { %s237_s22 = scalar_lea.sflag (!%p1959_p12), [#allocation3], %s1665_s14  ;;  %s1669_s28 = scalar_lea.vmem (!%p1959_p12), [#allocation2], %s929_s13 }
  0x81   : > { %1374 = dma.done.wait (%p1960_p1), %s237_s22, 2048  }
  0x82   : > { %1376 = vsyncadd (%p1960_p1), %s237_s22, 4294965248  ;;  %p1961_p11 = scmp.ne.s32.totalorder %s1948_s23, 0 }
  0x84   : > { %1378 = dma.done.wait (%p1961_p11), [#allocation6], 2048  }
  0x85   : > { %1380 = vsyncadd (%p1961_p11), [#allocation6], 4294965248 }
  0x86   : > { %1382 = dma.done.wait (%p1961_p11), [#allocation9], 16  }
  0x87   : > { %1384 = vsyncadd (%p1961_p11), [#allocation9], 4294967280  ;;  %vm296_vm0 = vcmask 523264   ;;  %v280_v0 = vld [vmem:[%s1669_s28 + $0x10] sm:$0xff]  ;;  %v279_v1 = vld [vmem:[%s1669_s28] sm:$0xff]  ;;  %s933_s23 = sshll.u32 %s1665_s14, 6 }
  0x88   : > { %v935_v2 = vld [vmem:[%s1669_s28 + $0x18] sm:$0xff]  ;;  %v300_v3 = vsel %vm296_vm0, %v280_v0, 0.0  ;;  %v297_v4 = vsel %vm296_vm0, %v279_v1, 0.0  ;;  %v934_v5 = vld [vmem:[%s1669_s28 + $0x8] sm:$0xff]  ;;  %v281_v9 = vld [vmem:[%s1669_s28 + $0x20] sm:$0xff]  ;;  %s1872_s25 = scalar_lea.vmem [#allocation10], %s933_s23 }
  0x89   : > { %301 = vadd.xlane.f32.xlu1 %v300_v3  ;;  %298 = vadd.xlane.f32.xlu0 %v297_v4  ;;  %v324_v6 = vsel %vm296_vm0, %v935_v2, 0.0  ;;  %v321_v7 = vsel %vm296_vm0, %v934_v5, 0.0  ;;  %v1692_v8 = vld [vmem:[%s1669_s28 + $0x28] sm:$0xff]  ;;  %v303_v11 = vsel %vm296_vm0, %v281_v9, 0.0  ;;  %v1699_v12 = vld [vmem:[%s1669_s28 + $0x38] sm:$0xff]  ;;  %v1702_v13 = vld [vmem:[%s1669_s28 + $0x30] sm:$0xff] }
  0x8a   : > { %v327_v10 = vsel %vm296_vm0, %v1692_v8, 0.0  ;;  %v330_v14 = vsel %vm296_vm0, %v1699_v12, 0.0  ;;  %v306_v15 = vsel %vm296_vm0, %v1702_v13, 0.0  ;;  %v1709_v16 = vld [vmem:[%s1669_s28 + $0x48] sm:$0xff]  ;;  %v1712_v17 = vld [vmem:[%s1669_s28 + $0x40] sm:$0xff]  ;;  %v1719_v20 = vld [vmem:[%s1669_s28 + $0x58] sm:$0xff] }
  0x8b   : > { %v333_v18 = vsel %vm296_vm0, %v1709_v16, 0.0  ;;  %v309_v19 = vsel %vm296_vm0, %v1712_v17, 0.0  ;;  %v1722_v21 = vld [vmem:[%s1669_s28 + $0x50] sm:$0xff]  ;;  %v336_v22 = vsel %vm296_vm0, %v1719_v20, 0.0  ;;  %v1729_v24 = vld [vmem:[%s1669_s28 + $0x68] sm:$0xff]  ;;  %v1732_v25 = vld [vmem:[%s1669_s28 + $0x60] sm:$0xff] }
  0x8c   : > { %v312_v23 = vsel %vm296_vm0, %v1722_v21, 0.0  ;;  %v339_v26 = vsel %vm296_vm0, %v1729_v24, 0.0  ;;  %v315_v27 = vsel %vm296_vm0, %v1732_v25, 0.0  ;;  %v1739_v28 = vld [vmem:[%s1669_s28 + $0x78] sm:$0xff]  ;;  %v1742_v29 = vld [vmem:[%s1669_s28 + $0x70] sm:$0xff]  ;;  %s802_s27 = sshll.u32 %s1872_s25, 4  ;;  %s1882_s27 = int_to_ptr.vmem [resolvable:$true] %s802_s27 }
  0x8d   : > { %325 = vadd.xlane.f32.xlu1 %v324_v6  ;;  %322 = vadd.xlane.f32.xlu0 %v321_v7  ;;  %v342_v30 = vsel %vm296_vm0, %v1739_v28, 0.0  ;;  %v318_v31 = vsel %vm296_vm0, %v1742_v29, 0.0  ;;  %s965_s5 = sshll.u32 %s1403_s18, 10  ;;  %s787_s26 = scalar_lea.sflag [#allocation4], %s1665_s14 }
  0x8e   : > { %s1887_s6 = scalar_lea.hbm %s1942_s4, %s965_s5  ;;  %s1321_s18 = scalar_lea.vmem %s1882_s27, 1024 }
  0x8f   : > { %p1322_p13 = scmp.ne.s32.totalorder %s1882_s27, %s1321_s18  ;;  %s1419_s9 = smov [#allocation10]  }
  0x90   : > { %s1325_s11 = sshll.u32 %s1419_s9, 4  ;;  %s1326_s11 = int_to_ptr.vmem [resolvable:$false] %s1325_s11 }
  0x91   : > { %328 = vadd.xlane.f32.xlu1 %v327_v10  ;;  %304 = vadd.xlane.f32.xlu0 %v303_v11  ;;  %p1323_p6 = pnand %p1322_p13, %p1604_p10  ;;  %s1327_s29 = scalar_lea.vmem %s1326_s11, 2048 }
  0x92   : > { %p1328_p5 = scmp.lt.s32.totalorder %s1882_s27, %s1326_s11  ;;  %p1329_p7 = scmp.lt.s32.totalorder %s1327_s29, %s1321_s18 }
  0x93   : > { %p1324_p3 = pneg %p1323_p6 }
  0x94   : > { %p1330_p9 = por %p1329_p7, %p1328_p5 }
  0x95   : > { %331 = vadd.xlane.f32.xlu1 %v330_v14  ;;  %307 = vadd.xlane.f32.xlu0 %v306_v15 }
  0x96   : > { %p1331_p0 = pnand %p1330_p9, %p1324_p3 }
  0x99   : > { %334 = vadd.xlane.f32.xlu1 %v333_v18  ;;  %310 = vadd.xlane.f32.xlu0 %v309_v19 }
  0x9d   : > { %337 = vadd.xlane.f32.xlu1 %v336_v22  ;;  %313 = vadd.xlane.f32.xlu0 %v312_v23 }
  0xa1   : > { %340 = vadd.xlane.f32.xlu1 %v339_v26  ;;  %316 = vadd.xlane.f32.xlu0 %v315_v27 }
  0xa5   : > { %343 = vadd.xlane.f32.xlu1 %v342_v30  ;;  %319 = vadd.xlane.f32.xlu0 %v318_v31 }
 0x116   : > { %v302_v32 = vpop.xlane.xlu1 %301  ;;  %v299_v33 = vpop.xlane.xlu0 %298 }
 0x11a   : > { %v326_v34 = vpop.xlane.xlu1 %325  ;;  %v323_v35 = vpop.xlane.xlu0 %322 }
 0x11b   : > { %v346_v36 = vadd.f32 %v326_v34, %v302_v32  ;;  %v345_v37 = vadd.f32 %v323_v35, %v299_v33 }
 0x11d   : > { %v354_v38 = vmul.f32 0.0078125, %v346_v36  ;;  %v353_v39 = vmul.f32 0.0078125, %v345_v37 }
 0x11e   : > { %v329_v40 = vpop.xlane.xlu1 %328  ;;  %v305_v41 = vpop.xlane.xlu0 %304 }
 0x11f   : > { %v1748_v42 = vsub.f32 %v280_v0, %v354_v38  ;;  %v1750_v43 = vsub.f32 %v935_v2, %v354_v38  ;;  %v1752_v44 = vsub.f32 %v279_v1, %v353_v39  ;;  %v1754_v45 = vsub.f32 %v934_v5, %v353_v39 }
 0x120   : > { %v347_v46 = vadd.f32 %v329_v40, %v305_v41 }
 0x121   : > { %v409_v47 = vmul.f32 %v1754_v45, %v1754_v45  ;;  %v377_v48 = vmul.f32 %v1752_v44, %v1752_v44  ;;  %v410_v52 = vmul.f32 %v1750_v43, %v1750_v43  ;;  %v378_v56 = vmul.f32 %v1748_v42, %v1748_v42 }
 0x122   : > { %v355_v49 = vmul.f32 0.0078125, %v347_v46  ;;  %v332_v50 = vpop.xlane.xlu1 %331  ;;  %v308_v51 = vpop.xlane.xlu0 %307 }
 0x123   : > { %v417_v53 = vsel %vm296_vm0, %v409_v47, 0.0  ;;  %v385_v54 = vsel %vm296_vm0, %v377_v48, 0.0  ;;  %v348_v55 = vadd.f32 %v332_v50, %v308_v51  ;;  %v420_v60 = vsel %vm296_vm0, %v410_v52, 0.0  ;;  %v497_v48 = vld [vmem:[#allocation7] sm:$0xff] }
 0x124   : > { %v1766_v57 = vsub.f32 %v281_v9, %v355_v49  ;;  %v1769_v58 = vsub.f32 %v1692_v8, %v355_v49  ;;  %418 = vadd.xlane.f32.xlu1 %v417_v53  ;;  %386 = vadd.xlane.f32.xlu0 %v385_v54  ;;  %v388_v3 = vsel %vm296_vm0, %v378_v56, 0.0  ;;  %v498_v49 = vld [vmem:[#allocation7 + $0x8] sm:$0xff]  ;;  %v489_v50 = vld [vmem:[#allocation5] sm:$0xff] }
 0x125   : > { %v356_v59 = vmul.f32 0.0078125, %v348_v55  ;;  %v1054_v52 = vpack.c.bf16 %v498_v49, %v497_v48  ;;  %v490_v53 = vld [vmem:[#allocation5 + $0x8] sm:$0xff] }
 0x126   : > { %v335_v61 = vpop.xlane.xlu1 %334  ;;  %v311_v62 = vpop.xlane.xlu0 %310  ;;  %v411_v63 = vmul.f32 %v1769_v58, %v1769_v58  ;;  %v379_v0 = vmul.f32 %v1766_v57, %v1766_v57  ;;  %v1070_v56 = vpack.c.bf16 %v490_v53, %v489_v50 }
 0x127   : > { %v1777_v1 = vsub.f32 %v1702_v13, %v356_v59  ;;  %v1780_v2 = vsub.f32 %v1699_v12, %v356_v59  ;;  %v349_v4 = vadd.f32 %v335_v61, %v311_v62  ;;  %1055 = vmatprep.subr.bf16.mxu1 %v1054_v52  ;;  %v500_v59 = vld [vmem:[#allocation7 + $0x18] sm:$0xff] }
 0x128   : > { %421 = vadd.xlane.f32.xlu1 %v420_v60  ;;  %389 = vadd.xlane.f32.xlu0 %v388_v3  ;;  %v423_v5 = vsel %vm296_vm0, %v411_v63, 0.0  ;;  %v391_v7 = vsel %vm296_vm0, %v379_v0, 0.0  ;;  %v491_v60 = vld [vmem:[#allocation5 + $0x10] sm:$0xff]  ;;  %v492_v62 = vld [vmem:[#allocation5 + $0x18] sm:$0xff] }
 0x129   : > { %v357_v6 = vmul.f32 0.0078125, %v349_v4  ;;  %v412_v8 = vmul.f32 %v1780_v2, %v1780_v2  ;;  %v380_v9 = vmul.f32 %v1777_v1, %v1777_v1  ;;  %1071 = vmatprep.subr.bf16.mxu0 %v1070_v56  ;;  %1057 = vmatpush3.bf16.msra.mxu1 %v1054_v52  ;;  %v1074_v3 = vpack.c.bf16 %v492_v62, %v491_v60  ;;  %v501_v4 = vld [vmem:[#allocation7 + $0x20] sm:$0xff] }
 0x12a   : > { %v338_v10 = vpop.xlane.xlu1 %337  ;;  %v314_v11 = vpop.xlane.xlu0 %313  ;;  %1073 = vmatpush3.bf16.msra.mxu0 %v1070_v56 }
 0x12b   : > { %v1790_v12 = vsub.f32 %v1712_v17, %v357_v6  ;;  %v1793_v13 = vsub.f32 %v1709_v16, %v357_v6  ;;  %v350_v14 = vadd.f32 %v338_v10, %v314_v11  ;;  %v426_v15 = vsel %vm296_vm0, %v412_v8, 0.0  ;;  %1075 = vmatprep.subr.bf16.mxu0 %v1074_v3  ;;  %v493_v6 = vld [vmem:[#allocation5 + $0x20] sm:$0xff]  ;;  %v494_v8 = vld [vmem:[#allocation5 + $0x28] sm:$0xff]  ;;  %v503_v10 = vld [vmem:[#allocation7 + $0x30] sm:$0xff] }
 0x12c   : > { %424 = vadd.xlane.f32.xlu1 %v423_v5  ;;  %392 = vadd.xlane.f32.xlu0 %v391_v7  ;;  %v394_v19 = vsel %vm296_vm0, %v380_v9, 0.0  ;;  %v502_v5 = vld [vmem:[#allocation7 + $0x28] sm:$0xff]  ;;  %v1078_v9 = vpack.c.bf16 %v494_v8, %v493_v6  ;;  %v504_v11 = vld [vmem:[#allocation7 + $0x38] sm:$0xff] }
 0x12d   : > { %v358_v18 = vmul.f32 0.0078125, %v350_v14  ;;  %v413_v22 = vmul.f32 %v1793_v13, %v1793_v13  ;;  %v381_v23 = vmul.f32 %v1790_v12, %v1790_v12  ;;  %v1062_v7 = vpack.c.bf16 %v502_v5, %v501_v4  ;;  %v495_v14 = vld [vmem:[#allocation5 + $0x30] sm:$0xff] }
 0x12e   : > { %v341_v26 = vpop.xlane.xlu1 %340  ;;  %v317_v17 = vpop.xlane.xlu0 %316  ;;  %1077 = vmatpush3.bf16.msra.mxu0 %v1074_v3 }
 0x12f   : > { %v1802_v27 = vsub.f32 %v1722_v21, %v358_v18  ;;  %v1805_v16 = vsub.f32 %v1719_v20, %v358_v18  ;;  %v351_v30 = vadd.f32 %v341_v26, %v317_v17  ;;  %v429_v31 = vsel %vm296_vm0, %v413_v22, 0.0  ;;  %1079 = vmatprep.subr.bf16.mxu0 %v1078_v9  ;;  %v496_v18 = vld [vmem:[#allocation5 + $0x38] sm:$0xff] }
 0x130   : > { %427 = vadd.xlane.f32.xlu1 %v426_v15  ;;  %395 = vadd.xlane.f32.xlu0 %v394_v19  ;;  %v397_v33 = vsel %vm296_vm0, %v381_v23, 0.0  ;;  %v1066_v15 = vpack.c.bf16 %v504_v11, %v503_v10  ;;  %v1082_v19 = vpack.c.bf16 %v496_v18, %v495_v14 }
 0x131   : > { %v359_v32 = vmul.f32 0.0078125, %v351_v30  ;;  %v414_v34 = vmul.f32 %v1805_v16, %v1805_v16  ;;  %v382_v35 = vmul.f32 %v1802_v27, %v1802_v27 }
 0x132   : > { %v344_v36 = vpop.xlane.xlu1 %343  ;;  %v320_v21 = vpop.xlane.xlu0 %319  ;;  %1081 = vmatpush3.bf16.msra.mxu0 %v1078_v9 }
 0x133   : > { %v1814_v37 = vsub.f32 %v1732_v25, %v359_v32  ;;  %v1817_v20 = vsub.f32 %v1729_v24, %v359_v32  ;;  %v352_v38 = vadd.f32 %v344_v36, %v320_v21  ;;  %v432_v39 = vsel %vm296_vm0, %v414_v34, 0.0  ;;  %1083 = vmatprep.subr.bf16.mxu0 %v1082_v19 }
 0x134   : > { %430 = vadd.xlane.f32.xlu1 %v429_v31  ;;  %398 = vadd.xlane.f32.xlu0 %v397_v33  ;;  %v400_v41 = vsel %vm296_vm0, %v382_v35, 0.0 }
 0x135   : > { %v360_v40 = vmul.f32 0.0078125, %v352_v38  ;;  %v415_v46 = vmul.f32 %v1817_v20, %v1817_v20  ;;  %v383_v47 = vmul.f32 %v1814_v37, %v1814_v37 }
 0x136   : > { %1085 = vmatpush3.bf16.msra.mxu0 %v1082_v19 }
 0x137   : > { %v1826_v25 = vsub.f32 %v1742_v29, %v360_v40  ;;  %v1829_v24 = vsub.f32 %v1739_v28, %v360_v40  ;;  %v435_v51 = vsel %vm296_vm0, %v415_v46, 0.0  ;;  %v403_v54 = vsel %vm296_vm0, %v383_v47, 0.0  ;;  %v499_v28 = vld [vmem:[#allocation7 + $0x10] sm:$0xff] }
 0x138   : > { %433 = vadd.xlane.f32.xlu1 %v432_v39  ;;  %401 = vadd.xlane.f32.xlu0 %v400_v41  ;;  %v1058_v61 = vpack.c.bf16 %v500_v59, %v499_v28 }
 0x139   : > { %v416_v55 = vmul.f32 %v1829_v24, %v1829_v24  ;;  %v384_v29 = vmul.f32 %v1826_v25, %v1826_v25 }
 0x13a   : > { %1059 = vmatprep.subr.bf16.mxu1 %v1058_v61 }
 0x13b   : > { %v438_v63 = vsel %vm296_vm0, %v416_v55, 0.0  ;;  %v406_v0 = vsel %vm296_vm0, %v384_v29, 0.0  ;;  %1061 = vmatpush3.bf16.msra.mxu1 %v1058_v61 }
 0x13c   : > { %436 = vadd.xlane.f32.xlu1 %v435_v51  ;;  %404 = vadd.xlane.f32.xlu0 %v403_v54 }
 0x13d   : > { %1063 = vmatprep.subr.bf16.mxu1 %v1062_v7 }
 0x13f   : > { %1065 = vmatpush3.bf16.msra.mxu1 %v1062_v7 }
 0x140   : > { %439 = vadd.xlane.f32.xlu1 %v438_v63  ;;  %407 = vadd.xlane.f32.xlu0 %v406_v0 }
 0x141   : > { %1067 = vmatprep.subr.bf16.mxu1 %v1066_v15 }
 0x143   : > { %1069 = vmatpush3.bf16.msra.mxu1 %v1066_v15 }
 0x1b1   : > { %v419_v22 = vpop.xlane.xlu1 %418  ;;  %v387_v23 = vpop.xlane.xlu0 %386 }
 0x1b2   : > { %v441_v26 = vadd.f32 %v419_v22, %v387_v23 }
 0x1b4   : > { %v449_v17 = vmul.f32 0.0078125, %v441_v26 }
 0x1b5   : > { %v422_v30 = vpop.xlane.xlu1 %421  ;;  %v390_v31 = vpop.xlane.xlu0 %389 }
 0x1b6   : > { %v457_v32 = vadd.f32 1e-05, %v449_v17  ;;  %v442_v33 = vadd.f32 %v422_v30, %v390_v31 }
 0x1b8   : > { %1191 = vrsqrt.f32 %v457_v32  ;;  %v450_v34 = vmul.f32 0.0078125, %v442_v33  ;;  %v958_v32 = vld [vmem:[#allocation8] ss:$0 sm:$0xff] }
 0x1b9   : > { %v425_v35 = vpop.xlane.xlu1 %424  ;;  %v393_v36 = vpop.xlane.xlu0 %392 }
 0x1ba   : > { %v458_v21 = vadd.f32 1e-05, %v450_v34  ;;  %v443_v38 = vadd.f32 %v425_v35, %v393_v36 }
 0x1bc   : > { %1193 = vrsqrt.f32 %v458_v21  ;;  %v451_v39 = vmul.f32 0.0078125, %v443_v38 }
 0x1bd   : > { %v428_v40 = vpop.xlane.xlu1 %427  ;;  %v396_v41 = vpop.xlane.xlu0 %395 }
 0x1be   : > { %v459_v46 = vadd.f32 1e-05, %v451_v39  ;;  %v444_v47 = vadd.f32 %v428_v40, %v396_v41 }
 0x1c0   : > { %1195 = vrsqrt.f32 %v459_v46  ;;  %v452_v48 = vmul.f32 0.0078125, %v444_v47 }
 0x1c1   : > { %v431_v49 = vpop.xlane.xlu1 %430  ;;  %v399_v50 = vpop.xlane.xlu0 %398 }
 0x1c2   : > { %v1192_v51 = vpop.eup %1191  ;;  %v460_v52 = vadd.f32 1e-05, %v452_v48  ;;  %v445_v53 = vadd.f32 %v431_v49, %v399_v50 }
 0x1c3   : > { %v481_v54 = vmul.f32 %v1192_v51, %v1754_v45  ;;  %v473_v55 = vmul.f32 %v1192_v51, %v1752_v44 }
 0x1c4   : > { %1197 = vrsqrt.f32 %v460_v52  ;;  %v453_v29 = vmul.f32 0.0078125, %v445_v53 }
 0x1c5   : > { %v434_v56 = vpop.xlane.xlu1 %433  ;;  %1014 = vmatprep.mubr.msk.f32.mxu1 %vm296_vm0, %v481_v54  ;;  %1042 = vmatprep.mubr.msk.f32.mxu0 %vm296_vm0, %v473_v55  ;;  %v402_v28 = vpop.xlane.xlu0 %401 }
 0x1c6   : > { %v1194_v59 = vpop.eup %1193  ;;  %v461_v60 = vadd.f32 1e-05, %v453_v29  ;;  %v446_v61 = vadd.f32 %v434_v56, %v402_v28 }
 0x1c7   : > { %v482_v62 = vmul.f32 %v1194_v59, %v1750_v43  ;;  %v474_v63 = vmul.f32 %v1194_v59, %v1748_v42 }
 0x1c8   : > { %1199 = vrsqrt.f32 %v461_v60  ;;  %v454_v0 = vmul.f32 0.0078125, %v446_v61 }
 0x1c9   : > { %v437_v45 = vpop.xlane.xlu1 %436  ;;  %1015 = vmatmul.mubr.msk.f32.vlgmr.msra.gmra.mrb[0].mxu1 %vm296_vm0, %v482_v62  ;;  %1043 = vmatmul.mubr.msk.f32.vlgmr.msra.gmra.mrb[0].mxu0 %vm296_vm0, %v474_v63  ;;  %v405_v44 = vpop.xlane.xlu0 %404 }
 0x1ca   : > { %v1196_v3 = vpop.eup %1195  ;;  %v462_v4 = vadd.f32 1e-05, %v454_v0  ;;  %v447_v5 = vadd.f32 %v437_v45, %v405_v44 }
 0x1cb   : > { %v483_v6 = vmul.f32 %v1196_v3, %v1769_v58  ;;  %v475_v7 = vmul.f32 %v1196_v3, %v1766_v57 }
 0x1cc   : > { %1201 = vrsqrt.f32 %v462_v4  ;;  %v455_v8 = vmul.f32 0.0078125, %v447_v5 }
 0x1cd   : > { %v440_v43 = vpop.xlane.xlu1 %439  ;;  %1017 = vmatprep.mubr.msk.f32.mxu1 %vm296_vm0, %v483_v6  ;;  %1045 = vmatprep.mubr.msk.f32.mxu0 %vm296_vm0, %v475_v7  ;;  %v408_v42 = vpop.xlane.xlu0 %407 }
 0x1ce   : > { %v1198_v9 = vpop.eup %1197  ;;  %v463_v10 = vadd.f32 1e-05, %v455_v8  ;;  %v448_v11 = vadd.f32 %v440_v43, %v408_v42 }
 0x1cf   : > { %v484_v14 = vmul.f32 %v1198_v9, %v1780_v2  ;;  %v476_v15 = vmul.f32 %v1198_v9, %v1777_v1 }
 0x1d0   : > { %1203 = vrsqrt.f32 %v463_v10  ;;  %v456_v18 = vmul.f32 0.0078125, %v448_v11 }
 0x1d1   : > { %1018 = vmatmul.mubr.msk.f32.gmra.mrb[2].mxu1 %vm296_vm0, %v484_v14  ;;  %1046 = vmatmul.mubr.msk.f32.gmra.mrb[2].mxu0 %vm296_vm0, %v476_v15 }
 0x1d2   : > { %v1200_v57 = vpop.eup %1199  ;;  %v464_v58 = vadd.f32 1e-05, %v456_v18 }
 0x1d3   : > { %v485_v19 = vmul.f32 %v1200_v57, %v1793_v13  ;;  %v477_v22 = vmul.f32 %v1200_v57, %v1790_v12 }
 0x1d4   : > { %1205 = vrsqrt.f32 %v464_v58 }
 0x1d5   : > { %1020 = vmatprep.mubr.msk.f32.mxu1 %vm296_vm0, %v485_v19  ;;  %1048 = vmatprep.mubr.msk.f32.mxu0 %vm296_vm0, %v477_v22 }
 0x1d6   : > { %v1202_v2 = vpop.eup %1201 }
 0x1d7   : > { %v486_v1 = vmul.f32 %v1202_v2, %v1805_v16  ;;  %v478_v23 = vmul.f32 %v1202_v2, %v1802_v27 }
 0x1d9   : > { %1021 = vmatmul.mubr.msk.f32.gmra.mrb[4].mxu1 %vm296_vm0, %v486_v1  ;;  %1049 = vmatmul.mubr.msk.f32.gmra.mrb[4].mxu0 %vm296_vm0, %v478_v23 }
 0x1da   : > { %v1204_v26 = vpop.eup %1203 }
 0x1db   : > { %v487_v13 = vmul.f32 %v1204_v26, %v1817_v20  ;;  %v479_v12 = vmul.f32 %v1204_v26, %v1814_v37 }
 0x1dd   : > { %1023 = vmatprep.mubr.msk.f32.mxu1 %vm296_vm0, %v487_v13  ;;  %1051 = vmatprep.mubr.msk.f32.mxu0 %vm296_vm0, %v479_v12 }
 0x1de   : > { %v1206_v17 = vpop.eup %1205 }
 0x1df   : > { %v488_v30 = vmul.f32 %v1206_v17, %v1829_v24  ;;  %v480_v16 = vmul.f32 %v1206_v17, %v1826_v25 }
 0x1e1   : > { %1024 = vmatmul.mubr.msk.f32.gmra.mrb[6].mxu1 %vm296_vm0, %v488_v30  ;;  %1052 = vmatmul.mubr.msk.f32.gmra.mrb[6].mxu0 %vm296_vm0, %v480_v16 }
 0x29c   : > { %v1016_v27 = vpop.f32.mrb[0].mxu1  ;;  %v1044_v31 = vpop.f32.mrb[0].mxu0 }
 0x29d   : > { %v730_v20 = vadd.f32 %v1044_v31, %v1016_v27  ;;  %v595_v33 = vpop.f32.mrb[1].mxu1  ;;  %v724_v37 = vpop.f32.mrb[1].mxu0 }
 0x29e   : > { %v725_v34 = vadd.f32 %v724_v37, %v595_v33 }
 0x29f   : > { %v771_v35 = vadd.f32 %v958_v32, %v730_v20 }
 0x2a0   : > { %v770_v36 = vadd.f32 %v958_v32, %v725_v34 }
 0x2a1   : > { %779 = vst [vmem:[%s1872_s25 + $0x8] sm:$0xff] %v771_v35 }
 0x2a2   : > { %778 = vst [vmem:[%s1872_s25] sm:$0xff] %v770_v36 }
 0x2a4   : > { %v1019_v25 = vpop.f32.mrb[2].mxu1  ;;  %v1047_v24 = vpop.f32.mrb[2].mxu0 }
 0x2a5   : > { %v740_v21 = vadd.f32 %v1047_v24, %v1019_v25  ;;  %v605_v38 = vpop.f32.mrb[3].mxu1  ;;  %v734_v39 = vpop.f32.mrb[3].mxu0 }
 0x2a6   : > { %v735_v40 = vadd.f32 %v734_v39, %v605_v38 }
 0x2a7   : > { %v773_v41 = vadd.f32 %v958_v32, %v740_v21 }
 0x2a8   : > { %v772_v46 = vadd.f32 %v958_v32, %v735_v40 }
 0x2a9   : > { %781 = vst [vmem:[%s1872_s25 + $0x18] sm:$0xff] %v773_v41 }
 0x2aa   : > { %780 = vst [vmem:[%s1872_s25 + $0x10] sm:$0xff] %v772_v46 }
 0x2ac   : > { %v1022_v47 = vpop.f32.mrb[4].mxu1  ;;  %v1050_v48 = vpop.f32.mrb[4].mxu0 }
 0x2ad   : > { %v750_v49 = vadd.f32 %v1050_v48, %v1022_v47  ;;  %v615_v50 = vpop.f32.mrb[5].mxu1  ;;  %v744_v51 = vpop.f32.mrb[5].mxu0 }
 0x2ae   : > { %v745_v52 = vadd.f32 %v744_v51, %v615_v50 }
 0x2af   : > { %v775_v53 = vadd.f32 %v958_v32, %v750_v49 }
 0x2b0   : > { %v774_v54 = vadd.f32 %v958_v32, %v745_v52 }
 0x2b1   : > { %783 = vst [vmem:[%s1872_s25 + $0x28] sm:$0xff] %v775_v53 }
 0x2b2   : > { %782 = vst [vmem:[%s1872_s25 + $0x20] sm:$0xff] %v774_v54 }
 0x2b4   : > { %v1025_v55 = vpop.f32.mrb[6].mxu1  ;;  %v1053_v29 = vpop.f32.mrb[6].mxu0 }
 0x2b5   : > { %v760_v56 = vadd.f32 %v1053_v29, %v1025_v55  ;;  %v625_v28 = vpop.f32.mrb[7].mxu1  ;;  %v754_v59 = vpop.f32.mrb[7].mxu0 }
 0x2b6   : > { %v755_v60 = vadd.f32 %v754_v59, %v625_v28 }
 0x2b7   : > { %v777_v61 = vadd.f32 %v958_v32, %v760_v56 }
 0x2b8   : > { %v776_v62 = vadd.f32 %v958_v32, %v755_v60 }
 0x2b9   : > { %785 = vst [vmem:[%s1872_s25 + $0x38] sm:$0xff] %v777_v61 }
 0x2ba   : > { %784 = vst [vmem:[%s1872_s25 + $0x30] sm:$0xff] %v776_v62 }
 0x2bb   : > { %1334 = shalt.err (!%p1331_p0)
}
 0x2bc   : > { %s1335_s12 = scalar_lea.hbm %s1887_s6, 1024  ;;  %s1339_s22 = scalar_lea.hbm %s1942_s4, 2048 }
 0x2bd   : > { %p1336_p4 = scmp.ne.s32.totalorder %s1887_s6, %s1335_s12  ;;  %p1340_p12 = scmp.lt.u32.totalorder %s1887_s6, %s1942_s4 }
 0x2be   : > { %p1341_p1 = scmp.lt.u32.totalorder %s1339_s22, %s1335_s12  ;;  %p1343_p13 = scmp.lt.u32.totalorder %s1335_s12, %s1887_s6 }
 0x2bf   : > { %p1337_p2 = pnand %p1336_p4, %p1604_p10 }
 0x2c0   : > { %p1342_p11 = por %p1341_p1, %p1340_p12 }
 0x2c1   : > { %p1338_p8 = pneg %p1337_p2 }
 0x2c2   : > { %p1344_p6 = por %p1343_p13, %p1342_p11 }
 0x2c4   : > { %p1345_p3 = pnand %p1344_p6, %p1338_p8 }
 0x2c6   : > { %1348 = shalt.err (!%p1345_p3)
}
 0x2c7   : > { %s1420_s25 = smov 128   ;;  %s1421_s5 = smov 8  }
 0x2c8   : > { %1108 = dma.vmem_to_hbm [thread:$0]  (%p1604_p10), %s1882_s27, 1024, %s1887_s6, %s787_s26, %s1420_s25, %s1420_s25, %s1421_s5  }
 0x2c9 PF: > { %s1962_s7 = sld [smem:[#allocation15_spill]]  ;;  %s817_s24 = sand.u32 1, %s1391_s15  }
 0x2ca   : > { %p1964_p7 = scmp.ge.s32.totalorder %s1411_s20, 2  ;;  %s818_s18 = scalar_lea.sflag [#allocation4], %s817_s24 }
 0x2cf   : > { %p1963_p5 = scmp.ne.s32.totalorder %s1962_s7, 0 }
 0x2d1   : > { %p1125_p9 = pnand %p1964_p7, %p1963_p5 }
 0x2d3   : > { %1386 = dma.done.wait (!%p1125_p9), %s818_s18, 1024  }
 0x2d4   : > { %1388 = vsyncadd (!%p1125_p9), %s818_s18, 4294966272  ;;  %s22_s20 = sadd.s32 1, %s1411_s20   ;;  %s1965_s15 = smov %s1395_s16 }
 0x2d5   : > { %p19_p0 = scmp.ge.s32.totalorder %s22_s20, 4   ;;  %s1966_s16 = smov %s1399_s17 }
 0x2d6   : > { %s1967_s17 = smov %s1616_s21  ;;  %s1968_s18 = smov %s1407_s19 }
 0x2d7   : > { %s1969_s19 = smov %s1971_s10  ;;  %21 = sbr.rel (!%p19_p0) target bundleno = 8 (0x8), region = 94 }
 0x2de   :  { %823 = vsyncpa [#allocation3], 1 }
 0x2df   :  { %825 = vsyncpa [#allocation3 + $0x1], 1 }
 0x2e0   :  { %826 = vsyncpa [#allocation6], 1 }
 0x2e1   :  { %827 = vsyncpa [#allocation9], 1 }
 0x2e2   :  { %828 = vsyncpa [#allocation4], 1 }
 0x2e3   :  { %830 = vsyncpa [#allocation4 + $0x1], 1 }

</bundles_post_ra>
